<compile_context>
chip_gen: v6e
topology: v6e:2x2x1
jax: 0.10.0
libtpu: 0.0.40
codegen_flags: <defaults>
</compile_context>

<pallas_src>
import jax
import jax.numpy as jnp
from jax.experimental import pallas as pl
from jax.experimental.pallas import tpu as pltpu


def _mlp_kernel(x_ref, w1_ref, w23_ref, w4_ref, b_ref, o_ref):
    f32 = jnp.float32
    hidden = w1_ref.shape[1]
    out_size = o_ref.shape[1]
    cdt = w1_ref.dtype  # MXU operand dtype (f32 or bf16 storage)

    x = x_ref[...]
    if x.dtype != cdt:          # trace-time branch; no-op when dtypes already match
        x = x.astype(cdt)

    b = b_ref[...].astype(f32)          # (4, bw) packed biases, kept f32
    b1 = b[0:1, :hidden]
    b2 = b[1:2, :hidden]
    b3 = b[2:3, :hidden]
    b4 = b[3:4, :out_size]

    # Layer 1: Linear, NO activation (matches the PyTorch module)
    h = jnp.dot(x, w1_ref[...], preferred_element_type=f32) + b1

    # Layer 2: Linear + ReLU
    h = jnp.dot(h.astype(cdt), w23_ref[0], preferred_element_type=f32) + b2
    h = jnp.maximum(h, 0.0)

    # Layer 3: Linear + ReLU
    h = jnp.dot(h.astype(cdt), w23_ref[1], preferred_element_type=f32) + b3
    h = jnp.maximum(h, 0.0)

    # Output layer: Linear + numerically stable softmax over the last dim.
    # Exact divide so rows sum to 1 to f32 precision (PPO log-prob / entropy
    # math downstream may assume exact normalization).
    logits = jnp.dot(h.astype(cdt), w4_ref[...], preferred_element_type=f32) + b4
    m = jnp.max(logits, axis=-1, keepdims=True)
    e = jnp.exp(logits - m)
    denom = jnp.sum(e, axis=-1, keepdims=True)
    o_ref[...] = (e / denom).astype(o_ref.dtype)


def network_disc_forward(x, params, *, tm_max=2048):
    """x: (B, input_shape). params: dict with (in,out) weights and (1,out) biases
    (float32 or bfloat16 storage). Returns (B, output_size) float32 probabilities."""
    w1, w2, w3, w4 = params["w1"], params["w2"], params["w3"], params["w4"]
    b1, b2, b3, b4 = params["b1"], params["b2"], params["b3"], params["b4"]

    B, in_dim = x.shape
    hidden = w1.shape[1]
    out_size = w4.shape[1]
    bw = max(hidden, out_size)          # packed-bias lane width (full-dim block)

    # Pack w2/w3 into one operand.
    w23 = jnp.stack([w2, w3], axis=0)                                   # (2, H, H)

    # Pack all biases into one f32 (4, bw) operand (zero-padded rows; the pad
    # columns are sliced away inside the kernel, so plain zeros are fine).
    def _row(bvec):
        r = jnp.zeros((bw,), jnp.float32)
        return r.at[: bvec.shape[-1]].set(bvec.reshape(-1).astype(jnp.float32))

    b_all = jnp.stack([_row(b1), _row(b2), _row(b3), _row(b4)], axis=0)  # (4, bw)

    # Batch tile.  Large tiles amortize the ~0.35us/step grid overhead, but we
    # also want >= 2 grid steps for moderate B so both v7x TensorCores run
    # (the batch axis is marked "parallel").  Per-block VMEM at tm=2048 is
    # < 1 MiB, so no vmem_limit_bytes override is needed.
    if B <= 8:
        tm = B                                   # block == full dim (always legal)
    else:
        half = pl.cdiv(B, 2)
        tm = min(tm_max, ((half + 7) // 8) * 8)  # multiple of 8, >= 2 grid steps
    grid = (pl.cdiv(B, tm),)

    itemsize = jnp.dtype(x.dtype).itemsize
    param_bytes = sum(
        a.size * jnp.dtype(a.dtype).itemsize for a in (w1, w23, w4, b_all)
    )
    cost = pl.CostEstimate(
        flops=2 * B * (in_dim * hidden + 2 * hidden * hidden + hidden * out_size),
        transcendentals=B * out_size,
        bytes_accessed=B * in_dim * itemsize + param_bytes + B * out_size * 4,
    )

    return pl.pallas_call(
        _mlp_kernel,
        out_shape=jax.ShapeDtypeStruct((B, out_size), jnp.float32),
        grid_spec=pltpu.PrefetchScalarGridSpec(
            num_scalar_prefetch=0,
            grid=grid,
            in_specs=[
                pl.BlockSpec((tm, in_dim), lambda i: (i, 0)),            # x: batch-tiled
                pl.BlockSpec((in_dim, hidden), lambda i: (0, 0)),        # w1: resident
                pl.BlockSpec((2, hidden, hidden), lambda i: (0, 0, 0)),  # w2/w3: resident
                pl.BlockSpec((hidden, out_size), lambda i: (0, 0)),      # w4: resident
                pl.BlockSpec((4, bw), lambda i: (0, 0)),                 # packed biases
            ],
            # Narrow (tm, out_size) store: block dim == full array dim, so the
            # masked vst is legal and we avoid the 16x-padded f32 writeback +
            # extra XLA slice pass of the previous version.
            out_specs=pl.BlockSpec((tm, out_size), lambda i: (i, 0)),
        ),
        compiler_params=pltpu.CompilerParams(
            dimension_semantics=("parallel",),   # batch axis -> megacore on v7x
        ),
        cost_estimate=cost,
    )(x, w1, w23, w4, b_all)


def init_params(key, input_shape, output_size, hidden=64, dtype=jnp.float32):
    """Mimics PyTorch Linear default init (uniform +/- 1/sqrt(fan_in))."""
    def linear(k, fan_in, fan_out):
        kw, kb = jax.random.split(k)
        bound = 1.0 / jnp.sqrt(float(fan_in))
        w = jax.random.uniform(kw, (fan_in, fan_out), jnp.float32, -bound, bound)
        b = jax.random.uniform(kb, (1, fan_out), jnp.float32, -bound, bound)
        return w.astype(dtype), b.astype(dtype)

    k1, k2, k3, k4 = jax.random.split(key, 4)
    w1, b1 = linear(k1, input_shape, hidden)
    w2, b2 = linear(k2, hidden, hidden)
    w3, b3 = linear(k3, hidden, hidden)
    w4, b4 = linear(k4, hidden, output_size)
    return {"w1": w1, "b1": b1, "w2": w2, "b2": b2,
            "w3": w3, "b3": b3, "w4": w4, "b4": b4}


def reference_forward(x, p, compute_dtype=jnp.float32):
    """Pure-JAX reference mirroring the kernel's precision policy."""
    f32 = jnp.float32
    cdt = compute_dtype
    h = jnp.dot(x.astype(cdt), p["w1"].astype(cdt),
                preferred_element_type=f32) + p["b1"].astype(f32)
    h = jnp.maximum(jnp.dot(h.astype(cdt), p["w2"].astype(cdt),
                            preferred_element_type=f32) + p["b2"].astype(f32), 0.0)
    h = jnp.maximum(jnp.dot(h.astype(cdt), p["w3"].astype(cdt),
                            preferred_element_type=f32) + p["b3"].astype(f32), 0.0)
    logits = jnp.dot(h.astype(cdt), p["w4"].astype(cdt),
                     preferred_element_type=f32) + p["b4"].astype(f32)
    return jax.nn.softmax(logits, axis=-1)


if __name__ == "__main__":
    input_shape = 16   # observation dim
    output_size = 8    # discrete action dim
    hidden = 64
    batch = 16

    key = jax.random.PRNGKey(0)
    kx, kp = jax.random.split(key)
    x = jax.random.normal(kx, (batch, input_shape), jnp.float32)
    params = init_params(kp, input_shape, output_size, hidden)

    # --- float32 path; default heuristic gives tm=8, grid=(2,) -> exercises
    #     the multi-step batch grid and partial-residency of the weights ---
    out = jax.block_until_ready(network_disc_forward(x, params))
    ref = reference_forward(x, params)
    assert out.shape == (batch, output_size)
    assert jnp.allclose(out, ref, atol=2e-3, rtol=2e-3), "f32 mismatch vs reference"
    assert jnp.allclose(jnp.sum(out, axis=-1), 1.0, atol=2e-3), "rows must sum to ~1"

    # --- single-block path (grid of 1, block == full batch dim) ---
    out_small = jax.block_until_ready(network_disc_forward(x[:8], params))
    assert jnp.allclose(out_small, ref[:8], atol=2e-3, rtol=2e-3), "single-block mismatch"

    # --- bfloat16 weight/activation storage (bandwidth + native-MXU win on
    #     v6e/v7x; elementwise math stays f32 so it's also safe on v5e) ---
    params_bf16 = {k: v.astype(jnp.bfloat16) for k, v in params.items()}
    x_bf16 = x.astype(jnp.bfloat16)
    out_bf16 = jax.block_until_ready(network_disc_forward(x_bf16, params_bf16))
    ref_bf16 = reference_forward(x_bf16, params_bf16, compute_dtype=jnp.bfloat16)
    assert jnp.allclose(out_bf16, ref_bf16, atol=3e-2, rtol=3e-2), "bf16 mismatch"
    assert jnp.allclose(jnp.sum(out_bf16, axis=-1), 1.0, atol=2e-3), "bf16 row sums"

    print("KERNEL_OK")
</pallas_src>

<mosaic_0001>
module attributes {stable_mosaic.version = 11 : i64} {
  func.func @_mlp_kernel(%arg0: i32, %arg1: memref<8x16xf32, #tpu.memory_space<vmem>>, %arg2: memref<16x64xf32, #tpu.memory_space<vmem>>, %arg3: memref<2x64x64xf32, #tpu.memory_space<vmem>>, %arg4: memref<64x8xf32, #tpu.memory_space<vmem>>, %arg5: memref<4x64xf32, #tpu.memory_space<vmem>>, %arg6: memref<8x8xf32, #tpu.memory_space<vmem>>) attributes {dimension_semantics = [#tpu.dimension_semantics<parallel>], iteration_bounds = array<i64: 2>, scalar_prefetch = 0 : i64, scratch_operands = 0 : i64, tpu.core_type = #tpu.core_type<tc>, window_params = [{transform_indices = @transform_0, window_bounds = array<i64: 8, 16>}, {pipeline_mode = #tpu.pipeline_mode<synchronous>, transform_indices = @transform_1, window_bounds = array<i64: 16, 64>}, {pipeline_mode = #tpu.pipeline_mode<synchronous>, transform_indices = @transform_2, window_bounds = array<i64: 2, 64, 64>}, {pipeline_mode = #tpu.pipeline_mode<synchronous>, transform_indices = @transform_3, window_bounds = array<i64: 64, 8>}, {pipeline_mode = #tpu.pipeline_mode<synchronous>, transform_indices = @transform_4, window_bounds = array<i64: 4, 64>}, {transform_indices = @transform_5, window_bounds = array<i64: 8, 8>}]} {
    %c0 = arith.constant 0 : index
    %c0_0 = arith.constant 0 : index
    %0 = vector.load %arg1[%c0, %c0_0] : memref<8x16xf32, #tpu.memory_space<vmem>>, vector<8x16xf32>
    %c0_1 = arith.constant 0 : index
    %c0_2 = arith.constant 0 : index
    %1 = vector.load %arg5[%c0_1, %c0_2] : memref<4x64xf32, #tpu.memory_space<vmem>>, vector<4x64xf32>
    %2 = vector.extract_strided_slice %1 {offsets = [0, 0], sizes = [1, 64], strides = [1, 1]} : vector<4x64xf32> to vector<1x64xf32>
    %3 = vector.extract_strided_slice %1 {offsets = [1, 0], sizes = [1, 64], strides = [1, 1]} : vector<4x64xf32> to vector<1x64xf32>
    %4 = vector.extract_strided_slice %1 {offsets = [2, 0], sizes = [1, 64], strides = [1, 1]} : vector<4x64xf32> to vector<1x64xf32>
    %5 = vector.extract_strided_slice %1 {offsets = [3, 0], sizes = [1, 8], strides = [1, 1]} : vector<4x64xf32> to vector<1x8xf32>
    %c0_3 = arith.constant 0 : index
    %c0_4 = arith.constant 0 : index
    %6 = vector.load %arg2[%c0_3, %c0_4] : memref<16x64xf32, #tpu.memory_space<vmem>>, vector<16x64xf32>
    %cst = arith.constant dense<0.000000e+00> : vector<8x64xf32>
    %7 = tpu.matmul %0, %6, %cst {dimension_numbers = #tpu.dot_dimension_numbers<[1], [0], [0], [1], [0, 0, 1, 1], [], []>} : vector<8x16xf32>, vector<16x64xf32>, vector<8x64xf32> -> vector<8x64xf32>
    %8 = vector.broadcast %2 : vector<1x64xf32> to vector<8x64xf32>
    %9 = arith.addf %7, %8 : vector<8x64xf32>
    %c0_5 = arith.constant 0 : index
    %c0_6 = arith.constant 0 : index
    %c0_7 = arith.constant 0 : index
    %10 = vector.load %arg3[%c0_5, %c0_6, %c0_7] : memref<2x64x64xf32, #tpu.memory_space<vmem>>, vector<1x64x64xf32>
    %11 = vector.shape_cast %10 : vector<1x64x64xf32> to vector<64x64xf32>
    %cst_8 = arith.constant dense<0.000000e+00> : vector<8x64xf32>
    %12 = tpu.matmul %9, %11, %cst_8 {dimension_numbers = #tpu.dot_dimension_numbers<[1], [0], [0], [1], [0, 0, 1, 1], [], []>} : vector<8x64xf32>, vector<64x64xf32>, vector<8x64xf32> -> vector<8x64xf32>
    %13 = vector.broadcast %3 : vector<1x64xf32> to vector<8x64xf32>
    %14 = arith.addf %12, %13 : vector<8x64xf32>
    %cst_9 = arith.constant 0.000000e+00 : f32
    %15 = vector.broadcast %cst_9 : f32 to vector<8x64xf32>
    %16 = arith.maximumf %14, %15 : vector<8x64xf32>
    %c1 = arith.constant 1 : index
    %c0_10 = arith.constant 0 : index
    %c0_11 = arith.constant 0 : index
    %17 = vector.load %arg3[%c1, %c0_10, %c0_11] : memref<2x64x64xf32, #tpu.memory_space<vmem>>, vector<1x64x64xf32>
    %18 = vector.shape_cast %17 : vector<1x64x64xf32> to vector<64x64xf32>
    %cst_12 = arith.constant dense<0.000000e+00> : vector<8x64xf32>
    %19 = tpu.matmul %16, %18, %cst_12 {dimension_numbers = #tpu.dot_dimension_numbers<[1], [0], [0], [1], [0, 0, 1, 1], [], []>} : vector<8x64xf32>, vector<64x64xf32>, vector<8x64xf32> -> vector<8x64xf32>
    %20 = vector.broadcast %4 : vector<1x64xf32> to vector<8x64xf32>
    %21 = arith.addf %19, %20 : vector<8x64xf32>
    %cst_13 = arith.constant 0.000000e+00 : f32
    %22 = vector.broadcast %cst_13 : f32 to vector<8x64xf32>
    %23 = arith.maximumf %21, %22 : vector<8x64xf32>
    %c0_14 = arith.constant 0 : index
    %c0_15 = arith.constant 0 : index
    %24 = vector.load %arg4[%c0_14, %c0_15] : memref<64x8xf32, #tpu.memory_space<vmem>>, vector<64x8xf32>
    %cst_16 = arith.constant dense<0.000000e+00> : vector<8x8xf32>
    %25 = tpu.matmul %23, %24, %cst_16 {dimension_numbers = #tpu.dot_dimension_numbers<[1], [0], [0], [1], [0, 0, 1, 1], [], []>} : vector<8x64xf32>, vector<64x8xf32>, vector<8x8xf32> -> vector<8x8xf32>
    %26 = vector.broadcast %5 : vector<1x8xf32> to vector<8x8xf32>
    %27 = arith.addf %25, %26 : vector<8x8xf32>
    %cst_17 = arith.constant dense<0xFF800000> : vector<8xf32>
    %28 = vector.multi_reduction <maximumf>, %27, %cst_17 [1] : vector<8x8xf32> to vector<8xf32>
    %29 = vector.shape_cast %28 : vector<8xf32> to vector<8x1xf32>
    %30 = vector.broadcast %29 : vector<8x1xf32> to vector<8x8xf32>
    %31 = arith.subf %27, %30 : vector<8x8xf32>
    %32 = math.exp %31 : vector<8x8xf32>
    %cst_18 = arith.constant dense<0.000000e+00> : vector<8xf32>
    %33 = vector.multi_reduction <add>, %32, %cst_18 [1] : vector<8x8xf32> to vector<8xf32>
    %34 = vector.shape_cast %33 : vector<8xf32> to vector<8x1xf32>
    %35 = vector.broadcast %34 : vector<8x1xf32> to vector<8x8xf32>
    %36 = arith.divf %32, %35 : vector<8x8xf32>
    %c0_19 = arith.constant 0 : index
    %c0_20 = arith.constant 0 : index
    %37 = vector.load %arg6[%c0_19, %c0_20] : memref<8x8xf32, #tpu.memory_space<vmem>>, vector<8x8xf32>
    tpu.vector_store %arg6[%c0_19, %c0_20], %36 {strides = array<i32>} : memref<8x8xf32, #tpu.memory_space<vmem>>, vector<8x8xf32>,
    return
  }
  func.func @transform_0(%arg0: i32) -> (i32, i32) {
    %c0_i32 = arith.constant 0 : i32
    %c0_i32_0 = arith.constant 0 : i32
    return %arg0, %c0_i32 : i32, i32
  }
  func.func @transform_1(%arg0: i32) -> (i32, i32) {
    %c0_i32 = arith.constant 0 : i32
    %c0_i32_0 = arith.constant 0 : i32
    %c0_i32_1 = arith.constant 0 : i32
    return %c0_i32, %c0_i32_0 : i32, i32
  }
  func.func @transform_2(%arg0: i32) -> (i32, i32, i32) {
    %c0_i32 = arith.constant 0 : i32
    %c0_i32_0 = arith.constant 0 : i32
    %c0_i32_1 = arith.constant 0 : i32
    %c0_i32_2 = arith.constant 0 : i32
    return %c0_i32, %c0_i32_0, %c0_i32_1 : i32, i32, i32
  }
  func.func @transform_3(%arg0: i32) -> (i32, i32) {
    %c0_i32 = arith.constant 0 : i32
    %c0_i32_0 = arith.constant 0 : i32
    %c0_i32_1 = arith.constant 0 : i32
    return %c0_i32, %c0_i32_0 : i32, i32
  }
  func.func @transform_4(%arg0: i32) -> (i32, i32) {
    %c0_i32 = arith.constant 0 : i32
    %c0_i32_0 = arith.constant 0 : i32
    %c0_i32_1 = arith.constant 0 : i32
    return %c0_i32, %c0_i32_0 : i32, i32
  }
  func.func @transform_5(%arg0: i32) -> (i32, i32) {
    %c0_i32 = arith.constant 0 : i32
    %c0_i32_0 = arith.constant 0 : i32
    return %arg0, %c0_i32 : i32, i32
  }
}

</mosaic_0001>

<bundles_post_ra>
// kernel: tpu_custom_call.1
= control target key start
LH: loop header
LB: loop body
LE: loop exit
PB: predicated region body
PF: predicated region fallthrough
CT: control target
= control target key end

     0   :  { %10 = vsyncpa [#allocation3], 0  ;;  %s863_s18 = smov 0   ;;  %s982_s0 = inlined_call_operand.vmem [shape: f32[16,16], index: 0, kind: input, shape index: {}]   ;;  %s983_s1 = inlined_call_operand.vmem [shape: f32[16,64], index: 1, kind: input, shape index: {}]   ;;  %s984_s2 = inlined_call_operand.hbm [shape: f32[2,64,64], index: 2, kind: input, shape index: {}]   ;;  %s985_s3 = inlined_call_operand.vmem [shape: f32[64,8], index: 3, kind: input, shape index: {}]   ;;  %s986_s4 = inlined_call_operand.vmem [shape: f32[4,64], index: 4, kind: input, shape index: {}]   ;;  %s987_s5 = inlined_call_operand.vmem [shape: f32[16,8], index: 5, kind: output, shape index: {}]  }
   0x1 LB: > { %s869_s19 = sadd.s32 4294967295, %s826_s18   ;;  %p656_p0 = scmp.ge.s32.totalorder %s826_s18, 1  ;;  %s826_s18 = sphi %s863_s18, %s16_s18  }
   0x2   : > { %p157_p1 = scmp.lt.s32.totalorder %s826_s18, 3  ;;  %s828_s20 = smov [#allocation2]  }
   0x3   : > { %s172_s21 = sshll.u32 %s828_s20, 4  ;;  %p771_p3 = scmp.eq.s32.totalorder %s869_s19, 0  ;;  %s173_s21 = int_to_ptr.vmem [resolvable:$true] %s172_s21 }
   0x4   : > { %p873_p2 = pnand %p656_p0, %p157_p1  ;;  %s801_s23 = scalar_lea.vmem %s173_s21, 2048 }
   0x5   : > { %p802_p7 = scmp.ne.s32.totalorder %s173_s21, %s801_s23  ;;  %p809_p10 = scmp.lt.s32.totalorder %s173_s21, %s173_s21 }
   0x6   : > { %p767_p4 = pneg %p873_p2  ;;  %p810_p11 = scmp.lt.s32.totalorder %s801_s23, %s801_s23 }
   0x8   : > { %p768_p5 = pnand %p771_p3, %p767_p4  ;;  %p811_p12 = por %p810_p11, %p809_p10 }
   0xa   : > { %p792_p6 = pneg %p768_p5 }
   0xc   : > { %p804_p8 = pnand %p802_p7, %p792_p6 }
   0xe   : > { %p805_p9 = pneg %p804_p8 }
  0x10   : > { %p812_p13 = pnand %p811_p12, %p805_p9 }
  0x12   : > { %815 = shalt.err (!%p812_p13)
}
  0x13   : > { %s829_s24 = smov 128   ;;  %s830_s25 = smov 8  }
  0x14   : > { %770 = dma.hbm_to_vmem [thread:$0]  (!%p768_p5), %s984_s2, 2048, %s173_s21, [#allocation3], %s829_s24, %s829_s24, %s830_s25  }
  0x15   : > { %201 = sbr.rel (%p873_p2) target bundleno = 1130 (0x46a), region = 40 }
  0x1a   : > { %821 = dma.done.wait (%p771_p3), [#allocation3], 2048  }
  0x1b   : > { %823 = vsyncadd (%p771_p3), [#allocation3], 4294965248  ;;  %p227_p0 = scmp.lt.s32.totalorder %s869_s19, 1  ;;  %v831_v0 = vmov 0.0   ;;  %vm832_vm0 = vmmov 0   ;;  %v238_v1 = vld [vmem:[%s983_s1 + $0x8] sm:$0xff]  ;;  %v239_v17 = vlaneseq }
  0x1c   : > { %699 = vmatprep.subr.mxu0 %v831_v0  ;;  %703 = vmatprep.mubr.msk.f32.mxu0 %vm832_vm0, %v831_v0  ;;  %v237_v2 = vld [vmem:[%s983_s1] sm:$0xff]  ;;  %vm243_vm1 = vcmask 130048   ;;  %v324_v4 = vld [vmem:[#allocation2 + $0x38] sm:$0xff]  ;;  %v323_v5 = vld [vmem:[#allocation2 + $0x30] sm:$0xff]  ;;  %vm329_vm2 = vcmask 523264   ;;  %vm576_vm3 = vcmask 64512  }
  0x1d   : > { %s990_s19 = smov (!%p227_p0, %s869_s19), 1  ;;  %706 = vmatprep.subr.mxu1 %v831_v0  ;;  %722 = vmatprep.mubr.msk.f32.mxu1 %vm832_vm0, %v831_v0  ;;  %v322_v6 = vld [vmem:[#allocation2 + $0x28] sm:$0xff]  ;;  %v321_v7 = vld [vmem:[#allocation2 + $0x20] sm:$0xff]  ;;  %v320_v8 = vld [vmem:[#allocation2 + $0x18] sm:$0xff]  ;;  %v240_v18 = vshrl.u32 %v239_v17, 7 }
  0x1e   : > { %s661_s28 = sshll.u32 %s990_s19, 3  ;;  %700 = vmatpush3.msra.mxu0 %v238_v1  ;;  %707 = vmatpush3.msra.mxu1 %v324_v4  ;;  %v319_v9 = vld [vmem:[#allocation2 + $0x10] sm:$0xff]  ;;  %v318_v10 = vld [vmem:[#allocation2 + $0x8] sm:$0xff]  ;;  %v317_v11 = vld [vmem:[#allocation2] sm:$0xff] }
  0x1f   : > { %s230_s6 = scalar_lea.vmem %s982_s0, %s661_s28  ;;  %701 = vmatprep.subr.mxu0 %v831_v0  ;;  %708 = vmatprep.subr.mxu1 %v831_v0  ;;  %v412_v12 = vld [vmem:[#allocation2 + $0x78] sm:$0xff]  ;;  %v411_v13 = vld [vmem:[#allocation2 + $0x70] sm:$0xff]  ;;  %v410_v14 = vld [vmem:[#allocation2 + $0x68] sm:$0xff]  ;;  %v241_v19 = vsub.s32 0, %v240_v18  ;;  %v327_v33 = vsub.s32 1, %v240_v18  ;;  %v415_v42 = vsub.s32 2, %v240_v18  ;;  %s234_s9 = scalar_lea.vmem %s987_s5, %s661_s28 }
  0x20   : > { %v235_v3 = vld [vmem:[%s230_s6] sm:$0xff]  ;;  %702 = vmatpush3.msra.mxu0 %v237_v2  ;;  %709 = vmatpush3.msra.mxu1 %v323_v5  ;;  %v408_v16 = vld [vmem:[#allocation2 + $0x58] sm:$0xff]  ;;  %v407_v25 = vld [vmem:[#allocation2 + $0x50] sm:$0xff]  ;;  %v501_v48 = vsub.s32 3, %v240_v18 }
  0x21   : > { %704 = vmatmul.mubr.msk.f32.vlgmr.msra.gmra.mxu0 %vm243_vm1, %v235_v3  ;;  %710 = vmatprep.subr.mxu1 %v831_v0  ;;  %v409_v15 = vld [vmem:[#allocation2 + $0x60] sm:$0xff]  ;;  %v406_v26 = vld [vmem:[#allocation2 + $0x48] sm:$0xff]  ;;  %v498_v28 = vld [vmem:[%s985_s3 + $0x38] sm:$0xff] }
  0x22   : > { %725 = vmatprep.subr.mxu0 %v831_v0  ;;  %711 = vmatpush3.msra.mxu1 %v322_v6  ;;  %v236_v20 = vld [vmem:[%s986_s4] sm:$0xf]  ;;  %v497_v29 = vld [vmem:[%s985_s3 + $0x30] sm:$0xff]  ;;  %v496_v30 = vld [vmem:[%s985_s3 + $0x28] sm:$0xff] }
  0x23   : > { %741 = vmatprep.mubr.msk.f32.mxu0 %vm832_vm0, %v831_v0  ;;  %712 = vmatprep.subr.mxu1 %v831_v0  ;;  %v242_v21 = vrot.slane %v236_v20, %v241_v19  ;;  %v405_v27 = vld [vmem:[#allocation2 + $0x40] sm:$0xff]  ;;  %v494_v32 = vld [vmem:[%s985_s3 + $0x18] sm:$0xff]  ;;  %v328_v34 = vrot.slane %v236_v20, %v327_v33  ;;  %v493_v39 = vld [vmem:[%s985_s3 + $0x10] sm:$0xff]  ;;  %v416_v43 = vrot.slane %v236_v20, %v415_v42 }
  0x24   : > { %713 = vmatpush3.msra.mxu1 %v321_v7  ;;  %726 = vmatpush3.msra.mxu0 %v412_v12  ;;  %v495_v31 = vld [vmem:[%s985_s3 + $0x20] sm:$0xff]  ;;  %v492_v40 = vld [vmem:[%s985_s3 + $0x8] sm:$0xff]  ;;  %v502_v49 = vrot.slane %v236_v20, %v501_v48 }
  0x25   : > { %714 = vmatprep.subr.mxu1 %v831_v0  ;;  %727 = vmatprep.subr.mxu0 %v831_v0  ;;  %v491_v41 = vld [vmem:[%s985_s3] sm:$0xff] }
  0x26   : > { %715 = vmatpush3.msra.mxu1 %v320_v8  ;;  %728 = vmatpush3.msra.mxu0 %v411_v13 }
  0x27   : > { %716 = vmatprep.subr.mxu1 %v831_v0  ;;  %729 = vmatprep.subr.mxu0 %v831_v0 }
  0x28   : > { %717 = vmatpush3.msra.mxu1 %v319_v9  ;;  %730 = vmatpush3.msra.mxu0 %v410_v14 }
  0x29   : > { %718 = vmatprep.subr.mxu1 %v831_v0  ;;  %731 = vmatprep.subr.mxu0 %v831_v0 }
  0x2a   : > { %719 = vmatpush3.msra.mxu1 %v318_v10  ;;  %732 = vmatpush3.msra.mxu0 %v409_v15 }
  0x2b   : > { %720 = vmatprep.subr.mxu1 %v831_v0  ;;  %733 = vmatprep.subr.mxu0 %v831_v0 }
  0x2c   : > { %721 = vmatpush3.msra.mxu1 %v317_v11  ;;  %734 = vmatpush3.msra.mxu0 %v408_v16 }
  0x2d   : > { %744 = vmatprep.subr.mxu1 %v831_v0  ;;  %735 = vmatprep.subr.mxu0 %v831_v0 }
  0x2e   : > { %736 = vmatpush3.msra.mxu0 %v407_v25 }
  0x2f   : > { %737 = vmatprep.subr.mxu0 %v831_v0 }
  0x30   : > { %738 = vmatpush3.msra.mxu0 %v406_v26 }
  0x31   : > { %739 = vmatprep.subr.mxu0 %v831_v0 }
  0x32   : > { %740 = vmatpush3.msra.mxu0 %v405_v27 }
  0xe1   : > { %v313_v22 = vpop.f32.mrf.mxu0 }
  0xe2   : > { %v314_v23 = vadd.f32 %v313_v22, %v242_v21 }
  0xe3   : > { %v705_v24 = vpop.f32.mrf.mxu0 }
  0xe4   : > { %723 = vmatmul.mubr.msk.f32.vlgmr.msra.gmra.mxu1 %vm329_vm2, %v314_v23 }
  0xe5   : > { %760 = vmatprep.mubr.msk.f32.mxu1 %vm832_vm0, %v831_v0  ;;  %745 = vmatpush3.msra.mxu1 %v498_v28 }
  0xe6   : > { %746 = vmatprep.subr.mxu1 %v831_v0 }
  0xe7   : > { %747 = vmatpush3.msra.mxu1 %v497_v29 }
  0xe8   : > { %748 = vmatprep.subr.mxu1 %v831_v0 }
  0xe9   : > { %749 = vmatpush3.msra.mxu1 %v496_v30 }
  0xea   : > { %750 = vmatprep.subr.mxu1 %v831_v0 }
  0xeb   : > { %751 = vmatpush3.msra.mxu1 %v495_v31 }
  0xec   : > { %752 = vmatprep.subr.mxu1 %v831_v0 }
  0xed   : > { %753 = vmatpush3.msra.mxu1 %v494_v32 }
  0xee   : > { %754 = vmatprep.subr.mxu1 %v831_v0 }
  0xef   : > { %755 = vmatpush3.msra.mxu1 %v493_v39 }
  0xf0   : > { %756 = vmatprep.subr.mxu1 %v831_v0 }
  0xf1   : > { %757 = vmatpush3.msra.mxu1 %v492_v40 }
  0xf2   : > { %758 = vmatprep.subr.mxu1 %v831_v0 }
  0xf3   : > { %759 = vmatpush3.msra.mxu1 %v491_v41 }
 0x1a4   : > { %v399_v35 = vpop.f32.mrf.mxu1 }
 0x1a5   : > { %v400_v36 = vadd.f32 %v399_v35, %v328_v34 }
 0x1a6   : > { %v724_v37 = vpop.f32.mrf.mxu1 }
 0x1a7   : > { %v403_v38 = vmax.f32 %v400_v36, 0.0 }
 0x1a9   : > { %742 = vmatmul.mubr.msk.f32.vlgmr.msra.gmra.mxu0 %vm329_vm2, %v403_v38 }
 0x269   : > { %v486_v44 = vpop.f32.mrf.mxu0 }
 0x26a   : > { %v487_v45 = vadd.f32 %v486_v44, %v416_v43 }
 0x26b   : > { %v743_v46 = vpop.f32.mrf.mxu0 }
 0x26c   : > { %v490_v47 = vmax.f32 %v487_v45, 0.0 }
 0x26e   : > { %761 = vmatmul.mubr.msk.f32.vlgmr.msra.gmra.mxu1 %vm329_vm2, %v490_v47 }
 0x32e   : > { %v572_v50 = vpop.f32.mrf.mxu1 }
 0x32f   : > { %v573_v51 = vadd.f32 %v572_v50, %v502_v49 }
 0x330   : > { %v762_v52 = vpop.f32.mrf.mxu1 }
 0x331   : > { %v577_v53 = vsel %vm576_vm3, %v573_v51, -inf }
 0x332   : > { %578 = vmax.xlane.f32.xlu0 %v577_v53 }
 0x3bb   : > { %v579_v54 = vpop.xlane.xlu0 %578 }
 0x3bc   : > { %v580_v55 = vsub.f32 %v573_v51, %v579_v54 }
 0x3be   : > { %v581_v56 = vmul.f32 1.442695, %v580_v55 }
 0x3c0   : > { %786 = vpow2.f32 %v581_v56 }
 0x3cd   : > { %v787_v57 = vpop.eup %786 }
 0x3ce   : > { %v583_v58 = vsel %vm576_vm3, %v787_v57, 0.0 }
 0x3cf   : > { %584 = vadd.xlane.f32.xlu0 %v583_v58 }
 0x458   : > { %v585_v59 = vpop.xlane.xlu0 %584 }
 0x459   : > { %788 = vrcp.f32 %v585_v59 }
 0x466   : > { %v789_v60 = vpop.eup %788 }
 0x467   : > { %v587_v61 = vmul.f32 %v789_v60, %v787_v57 }
 0x469   : > { %588 = vst.msk [vmem:[%s234_s9] sm:$0xff] %vm576_vm3, %v587_v61 }
 0x46a PF: > { %s16_s18 = sadd.s32 1, %s826_s18  }
 0x46b   : > { %p13_p1 = scmp.ge.s32.totalorder %s16_s18, 4  }
 0x46d   :  { %15 = sbr.rel (!%p13_p1) target bundleno = 1 (0x1), region = 76 }
 0x472   :  { %608 = vsyncpa [#allocation3], 1 }
 0x473   :  { %610 = vsyncpa [#allocation3 + $0x1], 1 }

</bundles_post_ra>
